<compile_context>
chip_gen: v7x
topology: tpu7x:2x2x1
jax: 0.10.0
libtpu: 0.0.40
codegen_flags: <defaults>
</compile_context>

<pallas_src>
import jax
import jax.numpy as jnp
from jax.experimental import pallas as pl
from jax.experimental.pallas import tpu as pltpu

BN_EPS = 1e-5


def _pick_tile_o(O):
    """Largest lane-dense (128-multiple) feature tile up to 512; full O otherwise."""
    if O % 128 == 0:
        for t in (512, 256, 128):
            if O % t == 0:
                return t
    return O


def residual_forward(x, w, gamma, beta, b=None):
    """CTGAN Residual forward.

    x: (B, I) f32, w: (I, O) f32 (== PyTorch weight.T), gamma/beta: (1, O) f32.
    b (linear bias) is accepted for API parity but intentionally unused:
    training-mode BatchNorm subtracts the per-feature batch mean, which cancels
    any per-feature constant exactly.

    Returns concat([relu(batchnorm(x @ w)), x], axis=1) of shape (B, O + I).
    """
    del b  # mathematically redundant under training-mode BN (see module docstring)
    B, I = x.shape
    O = w.shape[1]
    out_cols = O + I

    tile_o = _pick_tile_o(O)
    n_tiles = O // tile_o

    def kernel(x_ref, w_ref, gamma_ref, beta_ref, out_ref):
        j = pl.program_id(0)
        x_f32 = x_ref[...]                                        # (B, I) f32

        # Pass-through half of the fused concat: columns [O, O+I) <- x, once.
        @pl.when(j == 0)
        def _():
            out_ref[:, pl.ds(O, I)] = x_f32

        # Linear (no bias; cancelled by BN mean subtraction).
        # bf16 operands on the MXU, f32 accumulation.
        h = jnp.dot(x_f32.astype(jnp.bfloat16), w_ref[...],
                    preferred_element_type=jnp.float32)           # (B, tO) f32

        # BatchNorm1d training mode: per-feature batch stats (biased variance).
        mean = jnp.mean(h, axis=0, keepdims=True)                 # (1, tO)
        c = h - mean
        var = jnp.mean(c * c, axis=0, keepdims=True)              # (1, tO)

        # Fold gamma into the rsqrt (EUP) -> epilogue is one mul/add/max.
        scale = gamma_ref[...] * jax.lax.rsqrt(var + BN_EPS)      # (1, tO)
        y = jnp.maximum(c * scale + beta_ref[...], 0.0)           # ReLU, (B, tO)

        if n_tiles == 1:
            # Single tile: static, zero-offset store (also covers O % 128 != 0).
            out_ref[:, 0:tile_o] = y
        else:
            # tile_o is a 128-multiple here -> aligned dynamic lane offset.
            col = pl.multiple_of(j * tile_o, 128)
            out_ref[:, pl.ds(col, tile_o)] = y

    # VMEM budget (with headroom): resident x + double-buffered W tile +
    # resident full-width output + small per-feature vectors.
    vmem_needed = (
        2 * B * I * 4            # x block (default double-buffered)
        + 2 * I * tile_o * 2     # W tile (bf16, double-buffered)
        + 2 * B * out_cols * 4   # resident output block (+ margin)
        + 4 * 8 * tile_o * 4     # gamma/beta tiles (sublane-padded)
    )
    vmem_limit = int(min(max(2 * vmem_needed, 16 * 1024 * 1024), 64 * 1024 * 1024))

    cost = pl.CostEstimate(
        flops=2 * B * I * O,
        transcendentals=O,  # one rsqrt per output feature
        bytes_accessed=B * I * 4 + I * O * 2 + 2 * O * 4 + B * out_cols * 4,
    )

    out = pl.pallas_call(
        kernel,
        out_shape=jax.ShapeDtypeStruct((B, out_cols), jnp.float32),
        grid_spec=pltpu.PrefetchScalarGridSpec(
            num_scalar_prefetch=0,
            grid=(n_tiles,),
            in_specs=[
                # x: grid-invariant block -> fetched once, reused every tile.
                pl.BlockSpec((B, I), lambda j: (0, 0)),
                pl.BlockSpec((I, tile_o), lambda j: (0, j)),   # W feature tile
                pl.BlockSpec((1, tile_o), lambda j: (0, j)),   # gamma
                pl.BlockSpec((1, tile_o), lambda j: (0, j)),   # beta
            ],
            # Full-width output block revisited every step -> stays resident in
            # VMEM and is written back to HBM once (this is the fused concat).
            out_specs=pl.BlockSpec((B, out_cols), lambda j: (0, 0)),
        ),
        compiler_params=pltpu.CompilerParams(
            dimension_semantics=("arbitrary",),  # output block is revisited
            vmem_limit_bytes=vmem_limit,
        ),
        cost_estimate=cost,
    )(x, w.astype(jnp.bfloat16), gamma, beta)
    return out


def _reference(x, w, b, gamma, beta):
    h = x @ w + b
    mean = jnp.mean(h, axis=0, keepdims=True)
    var = jnp.mean((h - mean) ** 2, axis=0, keepdims=True)
    y = (h - mean) * jax.lax.rsqrt(var + BN_EPS) * gamma + beta
    y = jnp.maximum(y, 0.0)
    return jnp.concatenate([y, x], axis=1)


def _run_case(key, B, I, O):
    kx, kw, kb, kg, kbt = jax.random.split(key, 5)
    x = jax.random.normal(kx, (B, I), dtype=jnp.float32)

    bound = 1.0 / float(I) ** 0.5
    w = jax.random.uniform(kw, (I, O), minval=-bound, maxval=bound,
                           dtype=jnp.float32)          # = PyTorch weight.T
    b = jax.random.uniform(kb, (1, O), minval=-bound, maxval=bound,
                           dtype=jnp.float32)          # bias (cancelled by BN)
    gamma = jax.random.uniform(kg, (1, O), minval=0.5, maxval=1.5,
                               dtype=jnp.float32)
    beta = 0.1 * jax.random.normal(kbt, (1, O), dtype=jnp.float32)

    out = residual_forward(x, w, gamma, beta, b=b)
    jax.block_until_ready(out)

    ref = _reference(x, w, b, gamma, beta)
    assert out.shape == (B, O + I)
    # bf16 MXU operands vs f32 reference -> modest tolerance after BN.
    err = float(jnp.max(jnp.abs(out - ref)))
    assert jnp.allclose(out, ref, atol=2e-2, rtol=2e-2), err
    # Pass-through columns must be bit-exact f32.
    assert bool(jnp.array_equal(out[:, O:], x))


if __name__ == "__main__":
    key = jax.random.PRNGKey(0)
    k0, k1 = jax.random.split(key)

    # Toy shape from the module: Residual(i=32, o=64), batch=8 (single tile,
    # static-offset stores, unaligned concat offset handled in-kernel).
    _run_case(k0, B=8, I=32, O=64)

    # Lane-dense multi-tile path: Residual(i=256, o=1024), batch=32
    # (two 512-wide feature tiles, fused concat at an aligned offset).
    _run_case(k1, B=32, I=256, O=1024)

    print("KERNEL_OK")
</pallas_src>

<mosaic_0001>
module attributes {stable_mosaic.version = 11 : i64} {
  func.func @kernel(%arg0: i32, %arg1: memref<8x32xf32, #tpu.memory_space<vmem>>, %arg2: memref<32x64xbf16, #tpu.memory_space<vmem>>, %arg3: memref<1x64xf32, #tpu.memory_space<vmem>>, %arg4: memref<1x64xf32, #tpu.memory_space<vmem>>, %arg5: memref<8x96xf32, #tpu.memory_space<vmem>>) attributes {dimension_semantics = [#tpu.dimension_semantics<arbitrary>], iteration_bounds = array<i64: 1>, scalar_prefetch = 0 : i64, scratch_operands = 0 : i64, tpu.core_type = #tpu.core_type<tc>, window_params = [{pipeline_mode = #tpu.pipeline_mode<synchronous>, transform_indices = @transform_0, window_bounds = array<i64: 8, 32>}, {transform_indices = @transform_1, window_bounds = array<i64: 32, 64>}, {transform_indices = @transform_2, window_bounds = array<i64: 1, 64>}, {transform_indices = @transform_3, window_bounds = array<i64: 1, 64>}, {pipeline_mode = #tpu.pipeline_mode<synchronous>, transform_indices = @transform_4, window_bounds = array<i64: 8, 96>}]} {
    %c0 = arith.constant 0 : index
    %c0_0 = arith.constant 0 : index
    %0 = vector.load %arg1[%c0, %c0_0] : memref<8x32xf32, #tpu.memory_space<vmem>>, vector<8x32xf32>
    %c0_i32 = arith.constant 0 : i32
    %1 = arith.cmpi eq, %arg0, %c0_i32 : i32
    %2 = arith.extui %1 : i1 to i32
    %c0_i32_1 = arith.constant 0 : i32
    %3 = arith.cmpi ne, %2, %c0_i32_1 : i32
    scf.if %3 {
      %c0_16 = arith.constant 0 : index
      %c64 = arith.constant 64 : index
      %31 = vector.load %arg5[%c0_16, %c64] : memref<8x96xf32, #tpu.memory_space<vmem>>, vector<8x32xf32>
      tpu.vector_store %arg5[%c0_16, %c64], %0 {strides = array<i32>} : memref<8x96xf32, #tpu.memory_space<vmem>>, vector<8x32xf32>,
    } else {
    }
    %4 = arith.truncf %0 : vector<8x32xf32> to vector<8x32xbf16>
    %c0_2 = arith.constant 0 : index
    %c0_3 = arith.constant 0 : index
    %5 = vector.load %arg2[%c0_2, %c0_3] : memref<32x64xbf16, #tpu.memory_space<vmem>>, vector<32x64xbf16>
    %cst = arith.constant dense<0.000000e+00> : vector<8x64xf32>
    %6 = tpu.matmul %4, %5, %cst {dimension_numbers = #tpu.dot_dimension_numbers<[1], [0], [0], [1], [0, 0, 1, 1], [], []>} : vector<8x32xbf16>, vector<32x64xbf16>, vector<8x64xf32> -> vector<8x64xf32>
    %cst_4 = arith.constant dense<0.000000e+00> : vector<64xf32>
    %7 = vector.multi_reduction <add>, %6, %cst_4 [0] : vector<8x64xf32> to vector<64xf32>
    %8 = vector.shape_cast %7 : vector<64xf32> to vector<1x64xf32>
    %cst_5 = arith.constant 8.000000e+00 : f32
    %9 = vector.broadcast %cst_5 : f32 to vector<1x64xf32>
    %10 = arith.divf %8, %9 : vector<1x64xf32>
    %11 = vector.broadcast %10 : vector<1x64xf32> to vector<8x64xf32>
    %12 = arith.subf %6, %11 : vector<8x64xf32>
    %13 = arith.mulf %12, %12 : vector<8x64xf32>
    %cst_6 = arith.constant dense<0.000000e+00> : vector<64xf32>
    %14 = vector.multi_reduction <add>, %13, %cst_6 [0] : vector<8x64xf32> to vector<64xf32>
    %15 = vector.shape_cast %14 : vector<64xf32> to vector<1x64xf32>
    %cst_7 = arith.constant 8.000000e+00 : f32
    %16 = vector.broadcast %cst_7 : f32 to vector<1x64xf32>
    %17 = arith.divf %15, %16 : vector<1x64xf32>
    %c0_8 = arith.constant 0 : index
    %c0_9 = arith.constant 0 : index
    %18 = vector.load %arg3[%c0_8, %c0_9] : memref<1x64xf32, #tpu.memory_space<vmem>>, vector<1x64xf32>
    %cst_10 = arith.constant 9.99999974E-6 : f32
    %19 = vector.broadcast %cst_10 : f32 to vector<1x64xf32>
    %20 = arith.addf %17, %19 : vector<1x64xf32>
    %21 = math.rsqrt %20 : vector<1x64xf32>
    %22 = arith.mulf %18, %21 : vector<1x64xf32>
    %23 = vector.broadcast %22 : vector<1x64xf32> to vector<8x64xf32>
    %24 = arith.mulf %12, %23 : vector<8x64xf32>
    %c0_11 = arith.constant 0 : index
    %c0_12 = arith.constant 0 : index
    %25 = vector.load %arg4[%c0_11, %c0_12] : memref<1x64xf32, #tpu.memory_space<vmem>>, vector<1x64xf32>
    %26 = vector.broadcast %25 : vector<1x64xf32> to vector<8x64xf32>
    %27 = arith.addf %24, %26 : vector<8x64xf32>
    %cst_13 = arith.constant 0.000000e+00 : f32
    %28 = vector.broadcast %cst_13 : f32 to vector<8x64xf32>
    %29 = arith.maximumf %27, %28 : vector<8x64xf32>
    %c0_14 = arith.constant 0 : index
    %c0_15 = arith.constant 0 : index
    %30 = vector.load %arg5[%c0_14, %c0_15] : memref<8x96xf32, #tpu.memory_space<vmem>>, vector<8x64xf32>
    tpu.vector_store %arg5[%c0_14, %c0_15], %29 {strides = array<i32>} : memref<8x96xf32, #tpu.memory_space<vmem>>, vector<8x64xf32>,
    return
  }
  func.func @transform_0(%arg0: i32) -> (i32, i32) {
    %c0_i32 = arith.constant 0 : i32
    %c0_i32_0 = arith.constant 0 : i32
    %c0_i32_1 = arith.constant 0 : i32
    return %c0_i32, %c0_i32_0 : i32, i32
  }
  func.func @transform_1(%arg0: i32) -> (i32, i32) {
    %c0_i32 = arith.constant 0 : i32
    %c0_i32_0 = arith.constant 0 : i32
    return %c0_i32, %arg0 : i32, i32
  }
  func.func @transform_2(%arg0: i32) -> (i32, i32) {
    %c0_i32 = arith.constant 0 : i32
    %c0_i32_0 = arith.constant 0 : i32
    return %c0_i32, %arg0 : i32, i32
  }
  func.func @transform_3(%arg0: i32) -> (i32, i32) {
    %c0_i32 = arith.constant 0 : i32
    %c0_i32_0 = arith.constant 0 : i32
    return %c0_i32, %arg0 : i32, i32
  }
  func.func @transform_4(%arg0: i32) -> (i32, i32) {
    %c0_i32 = arith.constant 0 : i32
    %c0_i32_0 = arith.constant 0 : i32
    %c0_i32_1 = arith.constant 0 : i32
    return %c0_i32, %c0_i32_0 : i32, i32
  }
}

</mosaic_0001>

<bundles_post_ra>
// kernel: tpu_custom_call.1
= control target key start
LH: loop header
LB: loop body
LE: loop exit
PB: predicated region body
PF: predicated region fallthrough
CT: control target
= control target key end

     0   :  { %9 = vsyncpa [#allocation3], 0  ;;  %s356_s0 = inlined_call_operand.hbm [shape: f32[8,32], index: 0, kind: input, shape index: {}]   ;;  %s357_s1 = inlined_call_operand.hbm [shape: bf16[32,64], index: 1, kind: input, shape index: {}]   ;;  %s358_s2 = inlined_call_operand.vmem [shape: f32[1,64], index: 2, kind: input, shape index: {}]   ;;  %s359_s3 = inlined_call_operand.vmem [shape: f32[1,64], index: 3, kind: input, shape index: {}]   ;;  %s360_s4 = inlined_call_operand.hbm [shape: f32[8,96], index: 4, kind: output, shape index: {}]  }
   0x1   :  { %10 = vsyncpa [#allocation6], 0 }
   0x2   :  { %11 = vsyncpa [#allocation4], 0  ;;  %s272_s15 = smov [#allocation2]   ;;  %s273_s17 = smov [#allocation5]  }
   0x3   :  { %s18_s16 = sshll.u32 %s272_s15, 4  ;;  %s27_s18 = sshll.u32 %s273_s17, 4  ;;  %s19_s16 = int_to_ptr.vmem [resolvable:$true] %s18_s16  ;;  %s304_s18 = int_to_ptr.vmem [resolvable:$true] %s27_s18 }
   0x4   :  { %s200_s21 = scalar_lea.hbm %s356_s0, 128 }
   0x5   :  { %p201_p0 = scmp.ne.s32.totalorder %s356_s0, %s200_s21  ;;  %p204_p1 = scmp.lt.u32.totalorder %s200_s21, %s356_s0 }
   0x7   :  { %p206_p2 = pnand %p204_p1, %p201_p0 }
   0x9   :  { %209 = shalt.err (!%p206_p2)
}
   0xa   :  { %s210_s26 = scalar_lea.vmem %s19_s16, 128  ;;  %p215_p4 = scmp.lt.s32.totalorder %s19_s16, %s19_s16 }
   0xb   :  { %p211_p3 = scmp.ne.s32.totalorder %s19_s16, %s210_s26  ;;  %p216_p5 = scmp.lt.s32.totalorder %s210_s26, %s210_s26 }
   0xd   :  { %p217_p6 = por %p216_p5, %p215_p4 }
   0xf   :  { %p218_p7 = pnand %p217_p6, %p211_p3 }
  0x11   :  { %221 = shalt.err (!%p218_p7)
}
  0x12   :  { %21 = dma.hbm_to_vmem [thread:$0]  %s356_s0, 128, %s19_s16, [#allocation3]  }
  0x13   :  { %s222_s5 = scalar_lea.hbm %s357_s1, 256 }
  0x14   :  { %p223_p8 = scmp.ne.s32.totalorder %s357_s1, %s222_s5  ;;  %p226_p9 = scmp.lt.u32.totalorder %s222_s5, %s357_s1 }
  0x16   :  { %p228_p10 = pnand %p226_p9, %p223_p8 }
  0x18   :  { %231 = shalt.err (!%p228_p10)
}
  0x19   :  { %s232_s10 = scalar_lea.vmem %s304_s18, 256  ;;  %p237_p12 = scmp.lt.s32.totalorder %s304_s18, %s304_s18 }
  0x1a   :  { %p233_p11 = scmp.ne.s32.totalorder %s304_s18, %s232_s10  ;;  %p238_p13 = scmp.lt.s32.totalorder %s232_s10, %s232_s10 }
  0x1c   :  { %p239_p0 = por %p238_p13, %p237_p12 }
  0x1e   :  { %p240_p1 = pnand %p239_p0, %p233_p11 }
  0x20   :  { %243 = shalt.err (!%p240_p1)
}
  0x21   :  { %s274_s0 = smov 64   ;;  %s275_s11 = smov 4  }
  0x22   :  { %33 = dma.hbm_to_vmem [thread:$0]  %s357_s1, 256, %s304_s18, [#allocation6], %s274_s0, %s274_s0, %s275_s11  }
  0x23   :  { %266 = dma.done.wait [#allocation3], 128  }
  0x24   :  { %267 = vsyncadd [#allocation3], 4294967168 }
  0x25   :  { %268 = dma.done.wait [#allocation6], 256  }
  0x26   :  { %269 = vsyncadd [#allocation6], 4294967040  ;;  %v276_v0 = vmov 0.0   ;;  %vm277_vm0 = vmmov 0   ;;  %v196_v1 = vld [vmem:[#allocation5] sm:$0xff]   ;;  %v197_v2 = vld [vmem:[#allocation5 + $0x8] sm:$0xff]   ;;  %v142_v29 = vlaneseq }
  0x27   :  { %181 = vmatprep.subr.bf16.mxu0 %v276_v0  ;;  %185 = vmatprep.mubr.msk.bf16.mxu0 %vm277_vm0, %v276_v0  ;;  %v45_v3 = vld [vmem:[#allocation2] sm:$0xff]  ;;  %vm73_vm1 = vcmask 261120   ;;  %vm54_vm2 = vcmask 785920   ;;  %vm117_vm3 = vcmask 523264   ;;  %s278_s17 = smov [#allocation7]  }
  0x28   :  { %182 = vmatpush3.bf16.msra.mxu0 %v196_v1  ;;  %51 = vrot.lane.b32.xlu0 %v45_v3, %s274_s0  ;;  %v56_v4 = vpack.c.bf16 %v45_v3, %v45_v3  ;;  %v143_v30 = vshrl.u32 %v142_v29, 7  ;;  %v137_v31 = vld [vmem:[%s358_s2] sm:$0x1]  ;;  %s164_s18 = sshll.u32 %s278_s17, 4  ;;  %s165_s18 = int_to_ptr.vmem [resolvable:$true] %s164_s18 }
  0x29   :  { %183 = vmatprep.subr.bf16.mxu0 %v276_v0  ;;  %v177_v36 = vld [vmem:[%s359_s3] ss:$0 sm:$0xff]  ;;  %s244_s19 = scalar_lea.vmem %s165_s18, 128  ;;  %p249_p3 = scmp.lt.s32.totalorder %s165_s18, %s165_s18 }
  0x2a   :  { %v144_v32 = vsub.s32 0, %v143_v30  ;;  %p245_p2 = scmp.ne.s32.totalorder %s165_s18, %s244_s19  ;;  %p250_p4 = scmp.lt.s32.totalorder %s244_s19, %s244_s19 }
  0x2c   :  { %184 = vmatpush3.bf16.msra.mxu0 %v197_v2  ;;  %p251_p5 = por %p250_p4, %p249_p3 }
  0x2e   :  { %p252_p6 = pnand %p251_p5, %p245_p2 }
  0x2f   :  { %186 = vmatmul.mubr.msk.bf16.vlgmr.msra.gmra.mrb[0].mxu0 %vm73_vm1, %v56_v4 }
  0x9a   :  { %v52_v5 = vpop.permute.xlu0 %51 }
  0x9b   :  { %55 = vst.msk [vmem:[#allocation7] sm:$0xff] %vm54_vm2, %v52_v5 }
 0x102   :  { %v111_v6 = vpop.f32.mrb[0].mxu0 }
 0x103   :  { %v118_v7 = vsel %vm117_vm3, %v111_v6, 0.0  ;;  %v187_v8 = vpop.f32.mrb[1].mxu0 }
 0x104   :  { %v119_v9 = vrot.slane %v118_v7, 4  ;;  %v114_v10 = vpop.f32.mrb[2].mxu0 }
 0x105   :  { %v188_v11 = vpop.f32.mrb[3].mxu0 }
 0x106   :  { %v120_v12 = vadd.f32 %v119_v9, %v118_v7 }
 0x108   :  { %v121_v13 = vrot.slane %v120_v12, 2 }
 0x10a   :  { %v122_v14 = vadd.f32 %v121_v13, %v120_v12 }
 0x10c   :  { %v123_v15 = vrot.slane %v122_v14, 1 }
 0x10e   :  { %v124_v16 = vadd.f32 %v123_v15, %v122_v14 }
 0x110   :  { %v126_v17 = vmul.f32 0.125, %v124_v16 }
 0x112   :  { %v127_v18 = vsub.f32 %v111_v6, %v126_v17 }
 0x114   :  { %v128_v19 = vmul.f32 %v127_v18, %v127_v18 }
 0x116   :  { %v129_v20 = vsel %vm117_vm3, %v128_v19, 0.0 }
 0x117   :  { %v130_v21 = vrot.slane %v129_v20, 4 }
 0x119   :  { %v131_v22 = vadd.f32 %v130_v21, %v129_v20 }
 0x11b   :  { %v132_v23 = vrot.slane %v131_v22, 2 }
 0x11d   :  { %v133_v24 = vadd.f32 %v132_v23, %v131_v22 }
 0x11f   :  { %v134_v25 = vrot.slane %v133_v24, 1 }
 0x121   :  { %v135_v26 = vadd.f32 %v134_v25, %v133_v24 }
 0x123   :  { %v136_v27 = vmul.f32 0.125, %v135_v26 }
 0x125   :  { %v138_v28 = vadd.f32 1e-05, %v136_v27 }
 0x127   :  { %198 = vrsqrt.f32 %v138_v28 }
 0x131   :  { %v199_v33 = vpop.eup %198 }
 0x132   :  { %v140_v34 = vmul.f32 %v199_v33, %v137_v31 }
 0x134   :  { %v145_v35 = vrot.slane %v140_v34, %v144_v32 }
 0x136   :  { %v147_v37 = vmul.f32 %v145_v35, %v127_v18 }
 0x138   :  { %v155_v38 = vadd.f32 %v177_v36, %v147_v37 }
 0x13a   :  { %v156_v39 = vmax.f32 %v155_v38, 0.0 }
 0x13c   :  { %157 = vst.msk [vmem:[#allocation7] sm:$0xff] %vm117_vm3, %v156_v39 }
 0x13d   :  { %255 = shalt.err (!%p252_p6)
}
 0x13e   :  { %s256_s21 = scalar_lea.hbm %s360_s4, 128 }
 0x13f   :  { %p257_p7 = scmp.ne.s32.totalorder %s360_s4, %s256_s21  ;;  %p260_p8 = scmp.lt.u32.totalorder %s256_s21, %s360_s4 }
 0x141   :  { %p262_p9 = pnand %p260_p8, %p257_p7 }
 0x143   :  { %265 = shalt.err (!%p262_p9)
}
 0x144   :  { %167 = dma.vmem_to_hbm [thread:$0]  %s165_s18, 128, %s360_s4, [#allocation4]  }
 0x145   :  { %270 = dma.done.wait [#allocation4], 128  }
 0x146   :  { %271 = vsyncadd [#allocation4], 4294967168 }
 0x147   :  { %171 = vsyncpa [#allocation3], 1 }
 0x148   :  { %172 = vsyncpa [#allocation6], 1 }
 0x149   :  { %173 = vsyncpa [#allocation4], 1 }

</bundles_post_ra>
